<compile_context>
chip_gen: v6e
topology: v6e:2x2x1
jax: 0.10.0
libtpu: 0.0.40
codegen_flags: <defaults>
</compile_context>

<pallas_src>
import math
import functools

import jax
import jax.numpy as jnp
from jax import lax
from jax.experimental import pallas as pl
from jax.experimental.pallas import tpu as pltpu


# ----------------------------------------------------------------------------
# Kernel
# ----------------------------------------------------------------------------
def _self_attention_kernel(x_ref, w_ref, b_ref, gamma_ref, o_ref, *, r_pad, C):
    # x_ref:     (1, C, N)     current batch element, f32 (channels x spatial)
    # w_ref:     (P_pad, C)    fused [wq*scale ; wk ; wv ; 0-row], bf16
    # b_ref:     (P_pad, 1)    fused biases [bq*scale ; bk ; bv ; 1], f32
    # gamma_ref: (1,)          scalar in SMEM
    # o_ref:     (1, C, N)     f32

    # Fused Q/K/V(+ones) projection: one bf16 MXU matmul, f32 accumulate,
    # lane-broadcast bias add.  x is cast to bf16 only as a matmul operand.
    xb = x_ref[0].astype(jnp.bfloat16)                                  # (C, N)
    proj = jnp.dot(w_ref[...], xb,
                   preferred_element_type=jnp.float32) + b_ref[...]    # (P_pad, N) f32

    q = proj[0:r_pad, :].astype(jnp.bfloat16)            # (r_pad, N), scale folded in
    k = proj[r_pad:2 * r_pad, :].astype(jnp.bfloat16)    # (r_pad, N)
    # v rows plus the constant-ones row used for the softmax denominator.
    v_aug = proj[2 * r_pad:2 * r_pad + C + 1, :].astype(jnp.bfloat16)   # (C+1, N)

    # logits[i, j] = <k_i, q_j> (already scaled).  Transposed-LHS dot_general:
    # contract axis 0 of both operands so no explicit k.T / XLU transpose is
    # needed; zero-padded q/k rows contribute nothing.
    s = lax.dot_general(k, q,
                        dimension_numbers=(((0,), (0,)), ((), ())),
                        preferred_element_type=jnp.float32)             # (N, N)
    s = jnp.clip(s, -50.0, 50.0)

    # Softmax over keys (axis 0) per query column.  |s| <= 50 so f32 exp is
    # safe without a running-max subtraction.  e is kept in bf16 for the PV
    # matmul; the column sum comes out of the MXU via the ones row of v_aug.
    e = jnp.exp(s).astype(jnp.bfloat16)                                  # (N, N)

    ov = jnp.dot(v_aug, e, preferred_element_type=jnp.float32)          # (C+1, N)
    o_un = ov[0:C, :]                                                    # (C, N)
    inv_l = pl.reciprocal(ov[C:C + 1, :], approx=True)                   # (1, N)
    scale_row = inv_l * gamma_ref[0]                                     # (1, N)

    # Re-read x here (late) instead of keeping it live across the softmax.
    o_ref[0] = (x_ref[0] + o_un * scale_row).astype(o_ref.dtype)


# ----------------------------------------------------------------------------
# Wrapper (layout + fused parameter plumbing)
# ----------------------------------------------------------------------------
def self_attention(x_nchw, wq, wk, wv, bq, bk, bv, gamma):
    """x_nchw: (B, C, H, W); wq/wk: (r, C); wv: (C, C); bq/bk: (r,); bv: (C,); gamma: (1,)."""
    B, C, H, W = x_nchw.shape
    N = H * W
    r = wq.shape[0]
    scale = 1.0 / math.sqrt(r)
    r_pad = max(8, ((r + 7) // 8) * 8)        # pad q/k rows to a sublane multiple
    P = 2 * r_pad + C + 1                     # +1: ones row -> softmax denominator
    P_pad = ((P + 7) // 8) * 8

    # Native layout end-to-end: (B, C, N) in, (B, C, N) out (reshapes only).
    # x stays f32 in HBM so the gamma-gated residual is exact.
    x_bcn = x_nchw.reshape(B, C, N).astype(jnp.float32)

    def _pad_rows(w, rows):
        w = jnp.asarray(w, jnp.float32)
        pad = rows - w.shape[0]
        if pad == 0:
            return w
        return jnp.concatenate(
            [w, jnp.zeros((pad,) + w.shape[1:], jnp.float32)], axis=0)

    # Fold 1/sqrt(r) into the query projection; fuse Q/K/V weights & biases,
    # append the (0-weight, 1-bias) row that produces the ones row of proj.
    w_all = jnp.concatenate(
        [_pad_rows(jnp.asarray(wq, jnp.float32) * scale, r_pad),
         _pad_rows(wk, r_pad),
         jnp.asarray(wv, jnp.float32),
         jnp.zeros((1, C), jnp.float32)], axis=0)
    w_all = _pad_rows(w_all, P_pad).astype(jnp.bfloat16)                 # (P_pad, C)

    b_all = jnp.concatenate(
        [_pad_rows(jnp.asarray(bq, jnp.float32) * scale, r_pad),
         _pad_rows(bk, r_pad),
         jnp.asarray(bv, jnp.float32),
         jnp.ones((1,), jnp.float32)], axis=0)
    b_all = _pad_rows(b_all, P_pad).reshape(P_pad, 1)                    # (P_pad, 1)

    gamma_s = jnp.asarray(gamma, jnp.float32).reshape(1)

    kernel = functools.partial(_self_attention_kernel, r_pad=r_pad, C=C)

    out_bcn = pl.pallas_call(
        kernel,
        out_shape=jax.ShapeDtypeStruct((B, C, N), jnp.float32),
        grid_spec=pltpu.PrefetchScalarGridSpec(
            num_scalar_prefetch=0,
            grid=(B,),
            in_specs=[
                pl.BlockSpec((1, C, N), lambda b: (b, 0, 0)),            # x
                pl.BlockSpec((P_pad, C), lambda b: (0, 0)),              # fused W (bf16)
                pl.BlockSpec((P_pad, 1), lambda b: (0, 0)),              # fused bias
                pl.BlockSpec(memory_space=pltpu.MemorySpace.SMEM),       # gamma scalar
            ],
            out_specs=pl.BlockSpec((1, C, N), lambda b: (b, 0, 0)),
        ),
        compiler_params=pltpu.CompilerParams(
            dimension_semantics=("parallel",)),
    )(x_bcn, w_all, b_all, gamma_s)

    return out_bcn.reshape(B, C, H, W)


# ----------------------------------------------------------------------------
# Parameter setup (deterministic, in-script)
# ----------------------------------------------------------------------------
def _xavier_uniform(key, out_c, in_c, gain):
    bound = gain * math.sqrt(6.0 / (in_c + out_c))
    return jax.random.uniform(key, (out_c, in_c), jnp.float32, -bound, bound)


def _spectral_normalize(w, iters=50):
    # Deterministic power iteration (PyTorch's spectral_norm divides the
    # weight by its top singular value; fixed-iteration equivalent here).
    u = jnp.ones((w.shape[0],), jnp.float32) / math.sqrt(w.shape[0])
    for _ in range(iters):
        v = w.T @ u
        v = v / (jnp.linalg.norm(v) + 1e-12)
        u = w @ v
        u = u / (jnp.linalg.norm(u) + 1e-12)
    sigma = u @ (w @ v)
    return w / sigma


def _reference(x, wq, wk, wv, bq, bk, bv, gamma):
    """Pure-JAX f32 reference mirroring the PyTorch forward (NCHW)."""
    B, C, H, W = x.shape
    N = H * W
    r = wq.shape[0]
    xf = x.reshape(B, C, N)                                     # (B, C, N)
    q = jnp.einsum('rc,bcn->brn', wq, xf) + bq[None, :, None]   # (B, r, N)
    k = jnp.einsum('rc,bcn->brn', wk, xf) + bk[None, :, None]   # (B, r, N)
    v = jnp.einsum('oc,bcn->bon', wv, xf) + bv[None, :, None]   # (B, C, N)
    kT = jnp.transpose(k, (0, 2, 1))                            # (B, N, r)
    logits = jnp.einsum('bnr,brm->bnm', kT, q) / math.sqrt(r)   # (B, N, N)
    logits = jnp.clip(logits, -50.0, 50.0)
    attn = jax.nn.softmax(logits, axis=1)
    out = jnp.einsum('bcn,bnm->bcm', v, attn).reshape(B, C, H, W)
    return x + gamma * out


# ----------------------------------------------------------------------------
if __name__ == "__main__":
    B, C, H, W = 2, 32, 16, 16
    reduction_ratio = 8
    r = C // reduction_ratio

    key = jax.random.PRNGKey(0)
    k_x, k_q, k_k, k_v, k_bq, k_bk, k_bv = jax.random.split(key, 7)

    x = jax.random.normal(k_x, (B, C, H, W), jnp.float32)

    # 1x1 conv weights (out, in), xavier_uniform(gain=0.1), then spectral norm.
    wq = _spectral_normalize(_xavier_uniform(k_q, r, C, 0.1))
    wk = _spectral_normalize(_xavier_uniform(k_k, r, C, 0.1))
    wv = _spectral_normalize(_xavier_uniform(k_v, C, C, 0.1))
    bb = 1.0 / math.sqrt(C)
    bq = jax.random.uniform(k_bq, (r,), jnp.float32, -bb, bb)
    bk = jax.random.uniform(k_bk, (r,), jnp.float32, -bb, bb)
    bv = jax.random.uniform(k_bv, (C,), jnp.float32, -bb, bb)

    # gamma is initialized to zero in the module -> output must equal x exactly
    # (x stays f32 end-to-end on the residual path, attention branch is *0).
    gamma0 = jnp.zeros((1,), jnp.float32)
    y = self_attention(x, wq, wk, wv, bq, bk, bv, gamma0)
    jax.block_until_ready(y)
    y_ref = _reference(x, wq, wk, wv, bq, bk, bv, gamma0)
    assert jnp.allclose(y, y_ref, atol=1e-5), "mismatch at gamma=0"

    # Non-zero gamma so the attention path is exercised.  Tolerance reflects
    # bf16 MXU operands (~2^-9 relative per operand), the approximate
    # reciprocal, and the dropped max-subtraction, compared against an
    # all-f32 reference.
    gamma1 = jnp.full((1,), 0.5, jnp.float32)
    y1 = self_attention(x, wq, wk, wv, bq, bk, bv, gamma1)
    jax.block_until_ready(y1)
    y1_ref = _reference(x, wq, wk, wv, bq, bk, bv, gamma1)
    assert jnp.allclose(y1, y1_ref, atol=1e-2, rtol=1e-2), "mismatch at gamma=0.5"

    print("KERNEL_OK")
</pallas_src>

<mosaic_0001>
module attributes {stable_mosaic.version = 11 : i64} {
  func.func @_self_attention_kernel(%arg0: i32, %arg1: memref<1x32x256xf32, #tpu.memory_space<vmem>>, %arg2: memref<56x32xbf16, #tpu.memory_space<vmem>>, %arg3: memref<56x1xf32, #tpu.memory_space<vmem>>, %arg4: memref<1xf32, #tpu.memory_space<smem>>, %arg5: memref<1x32x256xf32, #tpu.memory_space<vmem>>) attributes {dimension_semantics = [#tpu.dimension_semantics<parallel>], iteration_bounds = array<i64: 2>, scalar_prefetch = 0 : i64, scratch_operands = 0 : i64, tpu.core_type = #tpu.core_type<tc>, window_params = [{transform_indices = @transform_0, window_bounds = array<i64: 1, 32, 256>}, {pipeline_mode = #tpu.pipeline_mode<synchronous>, transform_indices = @transform_1, window_bounds = array<i64: 56, 32>}, {pipeline_mode = #tpu.pipeline_mode<synchronous>, transform_indices = @transform_2, window_bounds = array<i64: 56, 1>}, {transform_indices = @transform_3, window_bounds = array<i64: 1>}, {transform_indices = @transform_4, window_bounds = array<i64: 1, 32, 256>}]} {
    %c0 = arith.constant 0 : index
    %c0_0 = arith.constant 0 : index
    %c0_1 = arith.constant 0 : index
    %0 = vector.load %arg1[%c0, %c0_0, %c0_1] : memref<1x32x256xf32, #tpu.memory_space<vmem>>, vector<1x32x256xf32>
    %1 = vector.shape_cast %0 : vector<1x32x256xf32> to vector<32x256xf32>
    %2 = arith.truncf %1 : vector<32x256xf32> to vector<32x256xbf16>
    %c0_2 = arith.constant 0 : index
    %c0_3 = arith.constant 0 : index
    %3 = vector.load %arg2[%c0_2, %c0_3] : memref<56x32xbf16, #tpu.memory_space<vmem>>, vector<56x32xbf16>
    %cst = arith.constant dense<0.000000e+00> : vector<56x256xf32>
    %4 = tpu.matmul %3, %2, %cst {dimension_numbers = #tpu.dot_dimension_numbers<[1], [0], [0], [1], [0, 0, 1, 1], [], []>} : vector<56x32xbf16>, vector<32x256xbf16>, vector<56x256xf32> -> vector<56x256xf32>
    %c0_4 = arith.constant 0 : index
    %c0_5 = arith.constant 0 : index
    %5 = vector.load %arg3[%c0_4, %c0_5] : memref<56x1xf32, #tpu.memory_space<vmem>>, vector<56x1xf32>
    %6 = vector.broadcast %5 : vector<56x1xf32> to vector<56x256xf32>
    %7 = arith.addf %4, %6 : vector<56x256xf32>
    %8 = vector.extract_strided_slice %7 {offsets = [0, 0], sizes = [8, 256], strides = [1, 1]} : vector<56x256xf32> to vector<8x256xf32>
    %9 = arith.truncf %8 : vector<8x256xf32> to vector<8x256xbf16>
    %10 = vector.extract_strided_slice %7 {offsets = [8, 0], sizes = [8, 256], strides = [1, 1]} : vector<56x256xf32> to vector<8x256xf32>
    %11 = arith.truncf %10 : vector<8x256xf32> to vector<8x256xbf16>
    %12 = vector.extract_strided_slice %7 {offsets = [16, 0], sizes = [33, 256], strides = [1, 1]} : vector<56x256xf32> to vector<33x256xf32>
    %13 = arith.truncf %12 : vector<33x256xf32> to vector<33x256xbf16>
    %cst_6 = arith.constant dense<0.000000e+00> : vector<256x256xf32>
    %14 = tpu.matmul %11, %9, %cst_6 {dimension_numbers = #tpu.dot_dimension_numbers<[0], [0], [1], [1], [0, 1, 1, 1], [], []>} : vector<8x256xbf16>, vector<8x256xbf16>, vector<256x256xf32> -> vector<256x256xf32>
    %cst_7 = arith.constant -5.000000e+01 : f32
    %cst_8 = arith.constant 5.000000e+01 : f32
    %15 = vector.broadcast %cst_7 : f32 to vector<256x256xf32>
    %16 = arith.maximumf %15, %14 : vector<256x256xf32>
    %17 = vector.broadcast %cst_8 : f32 to vector<256x256xf32>
    %18 = arith.minimumf %17, %16 : vector<256x256xf32>
    %19 = math.exp %18 : vector<256x256xf32>
    %20 = arith.truncf %19 : vector<256x256xf32> to vector<256x256xbf16>
    %cst_9 = arith.constant dense<0.000000e+00> : vector<33x256xf32>
    %21 = tpu.matmul %13, %20, %cst_9 {dimension_numbers = #tpu.dot_dimension_numbers<[1], [0], [0], [1], [0, 0, 1, 1], [], []>} : vector<33x256xbf16>, vector<256x256xbf16>, vector<33x256xf32> -> vector<33x256xf32>
    %22 = vector.extract_strided_slice %21 {offsets = [0, 0], sizes = [32, 256], strides = [1, 1]} : vector<33x256xf32> to vector<32x256xf32>
    %23 = vector.extract_strided_slice %21 {offsets = [32, 0], sizes = [1, 256], strides = [1, 1]} : vector<33x256xf32> to vector<1x256xf32>
    %24 = tpu.reciprocal %23 {approx = true} : vector<1x256xf32> -> vector<1x256xf32>
    %c0_10 = arith.constant 0 : index
    %25 = memref.load %arg4[%c0_10] : memref<1xf32, #tpu.memory_space<smem>>
    %26 = vector.broadcast %25 : f32 to vector<1x256xf32>
    %27 = arith.mulf %24, %26 : vector<1x256xf32>
    %c0_11 = arith.constant 0 : index
    %c0_12 = arith.constant 0 : index
    %c0_13 = arith.constant 0 : index
    %28 = vector.load %arg1[%c0_11, %c0_12, %c0_13] : memref<1x32x256xf32, #tpu.memory_space<vmem>>, vector<1x32x256xf32>
    %29 = vector.shape_cast %28 : vector<1x32x256xf32> to vector<32x256xf32>
    %30 = vector.broadcast %27 : vector<1x256xf32> to vector<32x256xf32>
    %31 = arith.mulf %22, %30 : vector<32x256xf32>
    %32 = arith.addf %29, %31 : vector<32x256xf32>
    %c0_14 = arith.constant 0 : index
    %c0_15 = arith.constant 0 : index
    %c0_16 = arith.constant 0 : index
    %33 = vector.load %arg5[%c0_14, %c0_15, %c0_16] : memref<1x32x256xf32, #tpu.memory_space<vmem>>, vector<1x32x256xf32>
    %34 = vector.shape_cast %33 : vector<1x32x256xf32> to vector<32x256xf32>
    %35 = vector.shape_cast %32 : vector<32x256xf32> to vector<1x32x256xf32>
    tpu.vector_store %arg5[%c0_14, %c0_15, %c0_16], %35 {strides = array<i32>} : memref<1x32x256xf32, #tpu.memory_space<vmem>>, vector<1x32x256xf32>,
    return
  }
  func.func @transform_0(%arg0: i32) -> (i32, i32, i32) {
    %c0_i32 = arith.constant 0 : i32
    %c0_i32_0 = arith.constant 0 : i32
    %c0_i32_1 = arith.constant 0 : i32
    return %arg0, %c0_i32, %c0_i32_0 : i32, i32, i32
  }
  func.func @transform_1(%arg0: i32) -> (i32, i32) {
    %c0_i32 = arith.constant 0 : i32
    %c0_i32_0 = arith.constant 0 : i32
    %c0_i32_1 = arith.constant 0 : i32
    return %c0_i32, %c0_i32_0 : i32, i32
  }
  func.func @transform_2(%arg0: i32) -> (i32, i32) {
    %c0_i32 = arith.constant 0 : i32
    %c0_i32_0 = arith.constant 0 : i32
    %c0_i32_1 = arith.constant 0 : i32
    return %c0_i32, %c0_i32_0 : i32, i32
  }
  func.func @transform_3(%arg0: i32) -> i32 {
    %c0_i32 = arith.constant 0 : i32
    %c0_i32_0 = arith.constant 0 : i32
    return %c0_i32 : i32
  }
  func.func @transform_4(%arg0: i32) -> (i32, i32, i32) {
    %c0_i32 = arith.constant 0 : i32
    %c0_i32_0 = arith.constant 0 : i32
    %c0_i32_1 = arith.constant 0 : i32
    return %arg0, %c0_i32, %c0_i32_0 : i32, i32, i32
  }
}

</mosaic_0001>

<bundles_post_ra>
// kernel: tpu_custom_call.1
= control target key start
LH: loop header
LB: loop body
LE: loop exit
PB: predicated region body
PF: predicated region fallthrough
CT: control target
= control target key end

     0   :  { %s2020_s0 = inlined_call_operand.hbm [shape: f32[2,32,256], index: 0, kind: input, shape index: {}]   ;;  %s2021_s1 = inlined_call_operand.vmem [shape: bf16[56,32], index: 1, kind: input, shape index: {}]   ;;  %s2022_s2 = inlined_call_operand.vmem [shape: f32[56,1], index: 2, kind: input, shape index: {}]   ;;  %s2023_s3 = inlined_call_operand.<no memory space> [shape: f32[1], index: 3, kind: input, shape index: {}]   ;;  %s2024_s4 = inlined_call_operand.hbm [shape: f32[2,32,256], index: 4, kind: output, shape index: {}]  }
   0x1   :  { %9 = sst [smem:[#allocation2]] %s2023_s3 }
   0x2   :  { %10 = vsyncpa [#allocation4], 0 }
   0x3   :  { %12 = vsyncpa [#allocation4 + $0x1], 0 }
   0x4   :  { %13 = vsyncpa [#allocation5], 0 }
   0x5   :  { %15 = vsyncpa [#allocation5 + $0x1], 0  ;;  %s1576_s17 = smov 0   ;;  %s1578_s18 = smov 0  }
   0x6   :  { %s1580_s19 = smov 0   ;;  %s1582_s20 = smov 0  }
   0x7 LB: > { %s1597_s3 = sadd.s32 4294967295, %s1539_s20   ;;  %s1146_s21 = sadd.s32 4294967294, %s1539_s20   ;;  %s1539_s20 = sphi %s1582_s20, %s2039_s20   ;;  %s1535_s19 = sphi %s1580_s19, %s2038_s19   ;;  %s1531_s18 = sphi %s1578_s18, %s2037_s18   ;;  %s1527_s17 = sphi %s1576_s17, %s2036_s17  }
   0x8   : > { %s1601_s22 = sadd.s32 1, %s1539_s20   ;;  %s28_s23 = sadd.s32 1, %s1535_s19 }
   0x9   : > { %s25_s24 = ssub.s32 %s1539_s20, %s1601_s22  ;;  %p35_p0 = scmp.ne.s32.totalorder %s1535_s19, %s1531_s18 }
   0xa   : > { %p26_p1 = scmp.eq.s32.totalorder %s25_s24, 0  ;;  %p36_p2 = scmp.eq.s32.totalorder %s1539_s20, 0 }
   0xb   : > { %p41_p3 = scmp.ne.s32.totalorder %s1531_s18, %s1527_s17  ;;  %p42_p4 = scmp.eq.s32.totalorder %s1597_s3, 0 }
   0xc   : > { %s1613_s25 = scalar_select %p26_p1, %s1535_s19, %s28_s23  }
   0xd   : > { %p1615_p5 = por %p36_p2, %p35_p0  ;;  %p1619_p6 = por %p42_p4, %p41_p3 }
   0xe   : > { %p128_p7 = scmp.eq.s32.totalorder %s1597_s3, 1  ;;  %p134_p8 = scmp.eq.s32.totalorder %s1146_s21, 1 }
   0xf   : > { %s2028_s27 = scalar_select %p1619_p6, 1, 0 }
  0x10   : > { %p1263_p10 = scmp.lt.s32.totalorder %s1539_s20, 2  ;;  %p1626_p11 = por %p128_p7, %p35_p0 }
  0x11   : > { %p1630_p12 = por %p134_p8, %p41_p3  ;;  %s163_s30 = sand.u32 1, %s1535_s19  }
  0x12   : > { %s2029_s28 = scalar_select %p1626_p11, 1, 0 }
  0x13   : > { %s2030_s29 = scalar_select %p1630_p12, 1, 0 }
  0x14   : > { %s1249_s5 = sshll.u32 %s1539_s20, 10  ;;  %s1149_s6 = sshll.u32 %s163_s30, 6 }
  0x15   : > { %s1639_s9 = scalar_lea.hbm %s2020_s0, %s1249_s5  ;;  %s167_s10 = scalar_lea.vmem [#allocation3], %s1149_s6 }
  0x16   : > { %s174_s11 = sshll.u32 %s167_s10, 4  ;;  %p1643_p13 = pnand %p1263_p10, %p1615_p5  ;;  %s1647_s11 = int_to_ptr.vmem [resolvable:$true] %s174_s11 }
  0x17   : > { %s1649_s13 = scalar_lea.sflag [#allocation4], %s163_s30  ;;  %s1447_s14 = scalar_lea.hbm %s1639_s9, 1024 }
  0x18   : > { %p1448_p0 = scmp.ne.s32.totalorder %s1639_s9, %s1447_s14  ;;  %p1449_p1 = pneg %p1643_p13 }
  0x19   : > { %s1452_s21 = scalar_lea.hbm %s2020_s0, 2048  ;;  %p1453_p4 = scmp.lt.s32.totalorder %s1639_s9, %s2020_s0 }
  0x1a   : > { %p1450_p2 = pnand %p1449_p1, %p1448_p0  ;;  %p1454_p5 = scmp.lt.s32.totalorder %s1452_s21, %s1447_s14 }
  0x1c   : > { %p1451_p3 = pneg %p1450_p2  ;;  %p1455_p7 = por %p1454_p5, %p1453_p4 }
  0x1e   : > { %p1456_p8 = pnand %p1455_p7, %p1451_p3 }
  0x20   : > { %1459 = shalt.err (!%p1456_p8)
}
  0x21   : > { %s1460_s26 = scalar_lea.vmem %s1647_s11, 1024  ;;  %s1541_s30 = smov [#allocation3]  }
  0x22   : > { %p1461_p10 = scmp.ne.s32.totalorder %s1647_s11, %s1460_s26  ;;  %s1465_s5 = sshll.u32 %s1541_s30, 4  ;;  %s1466_s5 = int_to_ptr.vmem [resolvable:$false] %s1465_s5 }
  0x23   : > { %s1467_s6 = scalar_lea.vmem %s1466_s5, 2048  ;;  %p1468_p2 = scmp.lt.s32.totalorder %s1647_s11, %s1466_s5 }
  0x24   : > { %p1463_p9 = pnand %p1461_p10, %p1449_p1  ;;  %p1469_p12 = scmp.lt.s32.totalorder %s1467_s6, %s1460_s26 }
  0x26   : > { %p1464_p0 = pneg %p1463_p9  ;;  %p1470_p11 = por %p1469_p12, %p1468_p2 }
  0x28   : > { %p1471_p6 = pnand %p1470_p11, %p1464_p0 }
  0x2a   : > { %1474 = shalt.err (!%p1471_p6)
}
  0x2b   : > { %s1542_s7 = smov 256   ;;  %s1543_s8 = smov 16  }
  0x2c   : > { %1258 = dma.hbm_to_vmem [thread:$0]  (!%p1643_p13), %s1639_s9, 1024, %s1647_s11, %s1649_s13, %s1542_s7, %s1542_s7, %s1543_s8  }
  0x2d   : > { %p1152_p9 = scmp.ge.s32.totalorder %s1539_s20, 1  ;;  %p182_p1 = scmp.lt.s32.totalorder %s1539_s20, 3 }
  0x2f   : > { %p183_p3 = pnand %p1152_p9, %p182_p1 }
  0x30   : > { %s1673_s10 = sand.u32 (!%p183_p3), 1, %s1531_s18   ;;  %p2032_p6 = scmp.ne.s32.totalorder (!%p183_p3), %s2028_s27, 0 }
  0x31   : > { %186 = sbr.rel (%p183_p3) target bundleno = 986 (0x3da), region = 36  ;;  %s1153_s14 = sshll.u32 (!%p183_p3), %s1673_s10, 6 }
  0x32   : > { %s189_s15 = scalar_lea.sflag (!%p183_p3), [#allocation4], %s1673_s10  ;;  %s1679_s16 = scalar_lea.vmem (!%p183_p3), [#allocation3], %s1153_s14 }
  0x36   : > { %1518 = dma.done.wait (%p2032_p6), %s189_s15, 1024  }
  0x37   : > { %1520 = vsyncadd (%p2032_p6), %s189_s15, 4294966272  ;;  %v1544_v0 = vmov 0   ;;  %v223_v1 = vld [vmem:[%s1679_s16 + $0x28] sm:$0xff]  ;;  %v225_v2 = vld [vmem:[%s1679_s16 + $0x38] sm:$0xff]  ;;  %vm297_vm0 = vcmask 261120   ;;  %vm472_vm1 = vcmask 1043456  }
  0x38   : > { %342 = vmatprep.mubr.bf16.mxu0 %v1544_v0  ;;  %1302 = vset.pattern.permute.xlu0 %v1544_v0  ;;  %v222_v3 = vld [vmem:[%s1679_s16 + $0x20] sm:$0xff]  ;;  %v229_v4 = vpack.c.bf16 %v225_v2, %v223_v1  ;;  %v224_v5 = vld [vmem:[%s1679_s16 + $0x30] sm:$0xff]  ;;  %v219_v6 = vld [vmem:[%s1679_s16 + $0x8] sm:$0xff]  ;;  %vm423_vm2 = vcmask 64512   ;;  %s1023_s24 = sld [smem:[#allocation2]]  ;;  %s1250_s26 = sshll.u32 %s1597_s3, 10 }
  0x39   : > { %511 = vmatprep.mubr.bf16.mxu1 %v1544_v0  ;;  %v221_v7 = vld [vmem:[%s1679_s16 + $0x18] sm:$0xff]  ;;  %v228_v8 = vpack.c.bf16 %v224_v5, %v222_v3  ;;  %v218_v10 = vld [vmem:[%s1679_s16] sm:$0xff]  ;;  %v220_v11 = vld [vmem:[%s1679_s16 + $0x10] sm:$0xff]  ;;  %s1953_s30 = scalar_lea.vmem [#allocation6], %s1153_s14  ;;  %s1967_s6 = scalar_lea.hbm %s2024_s4, %s1250_s26 }
  0x3a   : > { %v227_v9 = vpack.c.bf16 %v221_v7, %v219_v6  ;;  %322 = vmatprep.subr.bf16.mxu0 %v229_v4  ;;  %v226_v12 = vpack.c.bf16 %v220_v11, %v218_v10  ;;  %v238_v13 = vld [vmem:[%s2022_s2 + $0x8] sm:$0xff]  ;;  %v1303_v14 = vld [vmem:[%s2021_s1] sm:$0xff]   ;;  %v239_v16 = vld [vmem:[%s2022_s2 + $0x10] sm:$0xff]  ;;  %s1073_s5 = sshll.u32 %s1953_s30, 4  ;;  %s1060_s7 = scalar_lea.sflag [#allocation5], %s1673_s10  ;;  %s1969_s5 = int_to_ptr.vmem [resolvable:$true] %s1073_s5 }
  0x3b   : > { %323 = vmatpush1.bf16.msra.mxu0 %v228_v8  ;;  %251 = vperm.xlu0 %1302, %v238_v13   ;;  %v237_v15 = vld [vmem:[%s2022_s2] sm:$0xff]  ;;  %v1304_v17 = vld [vmem:[%s2021_s1 + $0x8] sm:$0xff]   ;;  %v240_v18 = vld [vmem:[%s2022_s2 + $0x18] sm:$0xff]  ;;  %s1475_s8 = scalar_lea.vmem %s1969_s5, 1024  ;;  %p2033_p12 = scmp.ne.s32.totalorder %s2029_s28, 0 }
  0x3c   : > { %324 = vmatprep.subr.bf16.mxu0 %v227_v9  ;;  %v241_v19 = vld [vmem:[%s2022_s2 + $0x20] sm:$0xff]  ;;  %v1305_v20 = vld [vmem:[%s2021_s1 + $0x10] sm:$0xff]   ;;  %v242_v21 = vld [vmem:[%s2022_s2 + $0x28] sm:$0xff]  ;;  %p1476_p11 = scmp.ne.s32.totalorder %s1969_s5, %s1475_s8  ;;  %s1545_s15 = smov [#allocation6]  }
  0x3d   : > { %v243_v22 = vld [vmem:[%s2022_s2 + $0x30] sm:$0xff]  ;;  %v1306_v23 = vld [vmem:[%s2021_s1 + $0x18] ss:$0 sps:$4 sm:$0xff]   ;;  %s1479_s27 = sshll.u32 %s1545_s15, 4  ;;  %s1480_s27 = int_to_ptr.vmem [resolvable:$false] %s1479_s27 }
  0x3e   : > { %p1477_p13 = pnand %p1476_p11, %p2033_p12  ;;  %s1481_s9 = scalar_lea.vmem %s1480_s27, 2048 }
  0x3f   : > { %325 = vmatpush1.bf16.msra.mxu0 %v226_v12  ;;  %246 = vperm.xlu0 %1302, %v237_v15   ;;  %p1482_p5 = scmp.lt.s32.totalorder %s1969_s5, %s1480_s27  ;;  %p1483_p7 = scmp.lt.s32.totalorder %s1481_s9, %s1475_s8 }
  0x40   : > { %p1478_p4 = pneg %p1477_p13 }
  0x41   : > { %p1484_p8 = por %p1483_p7, %p1482_p5 }
  0x42   : > { %1159 = vmatmul.mubr.msk.bf16.vlgmr.msra.gmra.mxu0 %vm297_vm0, %v1303_v14 }
  0x43   : > { %352 = vmatprep.mubr.bf16.mxu0 %v1544_v0  ;;  %256 = vperm.xlu0 %1302, %v239_v16   ;;  %p1485_p10 = pnand %p1484_p8, %p1478_p4 }
  0x47   : > { %261 = vperm.xlu0 %1302, %v240_v18  }
  0x4a   : > { %1160 = vmatmul.mubr.msk.bf16.gmra.mxu0 %vm297_vm0, %v1304_v17 }
  0x4b   : > { %362 = vmatprep.mubr.bf16.mxu0 %v1544_v0  ;;  %266 = vperm.xlu0 %1302, %v241_v19  }
  0x4f   : > { %271 = vperm.xlu0 %1302, %v242_v21  }
  0x52   : > { %1161 = vmatmul.mubr.msk.bf16.gmra.mxu0 %vm297_vm0, %v1305_v20 }
  0x53   : > { %372 = vmatprep.mubr.bf16.mxu0 %v1544_v0  ;;  %276 = vperm.xlu0 %1302, %v243_v22  }
  0x5a   : > { %1162 = vmatmul.mubr.msk.bf16.gmra.mxu0 %vm297_vm0, %v1306_v23 }
  0xb6   : > { %v252_v24 = vpop.permute.xlu0 %251 }
  0xba   : > { %v247_v25 = vpop.permute.xlu0 %246 }
  0xbe   : > { %v257_v28 = vpop.permute.xlu0 %256 }
  0xc2   : > { %v262_v38 = vpop.permute.xlu0 %261 }
  0xc6   : > { %v267_v44 = vpop.permute.xlu0 %266 }
  0xca   : > { %v272_v52 = vpop.permute.xlu0 %271 }
 0x102   : > { %v344_v26 = vpop.f32.mrf.mxu0 }
 0x103   : > { %v345_v27 = vadd.f32 %v344_v26, %v247_v25 }
 0x104   : > { %v346_v29 = vpop.f32.mrf.mxu0 }
 0x105   : > { %v381_v30 = vpack.c.bf16 %v345_v27, %v345_v27  ;;  %v347_v31 = vadd.f32 %v346_v29, %v247_v25 }
 0x106   : > { %v348_v32 = vpop.f32.mrf.mxu0 }
 0x107   : > { %v382_v33 = vpack.c.bf16 %v347_v31, %v347_v31  ;;  %v349_v34 = vadd.f32 %v348_v32, %v252_v24  ;;  %v474_v36 = vsel %vm472_vm1, %v381_v30, 0 }
 0x108   : > { %v350_v35 = vpop.f32.mrf.mxu0 }
 0x109   : > { %1163 = vmatprep.subr.msk.bf16.mxu1 %vm472_vm1, %v382_v33  ;;  %v383_v37 = vpack.c.bf16 %v349_v34, %v349_v34  ;;  %v351_v2 = vadd.f32 %v350_v35, %v252_v24 }
 0x10a   : > { %v354_v39 = vpop.f32.mrf.mxu0  ;;  %494 = vmatpush1.bf16.msra.mxu1 %v474_v36 }
 0x10b   : > { %391 = vxpose.xlu1.c.b16.start.end [1/1] (short) %v383_v37, 128  ;;  %v1736_v42 = vadd.f32 %v354_v39, %v257_v28  ;;  %v384_v3 = vpack.c.bf16 %v351_v2, %v351_v2 }
 0x10c   : > { %v356_v40 = vpop.f32.mrf.mxu0 }
 0x10d   : > { %v357_v46 = vadd.f32 %v356_v40, %v257_v28 }
 0x10e   : > { %v358_v41 = vpop.f32.mrf.mxu0 }
 0x10f   : > { %v1738_v43 = vadd.f32 %v358_v41, %v262_v38 }
 0x110   : > { %v360_v45 = vpop.f32.mrf.mxu0 }
 0x111   : > { %v385_v47 = vpack.c.bf16 %v1738_v43, %v1736_v42  ;;  %v361_v48 = vadd.f32 %v360_v45, %v262_v38 }
 0x112   : > { %v364_v49 = vpop.f32.mrf.mxu0 }
 0x113   : > { %v386_v50 = vpack.c.bf16 %v361_v48, %v357_v46  ;;  %v1742_v54 = vadd.f32 %v364_v49, %v267_v44 }
 0x114   : > { %v366_v51 = vpop.f32.mrf.mxu0 }
 0x115   : > { %992 = vmatprep.mubr.bf16.mxu0 %v386_v50  ;;  %v1746_v57 = vadd.f32 %v366_v51, %v267_v44 }
 0x116   : > { %v368_v53 = vpop.f32.mrf.mxu0 }
 0x117   : > { %v1744_v55 = vadd.f32 %v368_v53, %v272_v52 }
 0x118   : > { %v370_v56 = vpop.f32.mrf.mxu0 }
 0x119   : > { %v387_v58 = vpack.c.bf16 %v1744_v55, %v1742_v54  ;;  %v1750_v59 = vadd.f32 %v370_v56, %v272_v52  ;;  %v1027_v55 = vlaneseq }
 0x11a   : > { %v1752_v60 = vpop.f32.mrf.mxu0 }
 0x11b   : > { %v388_v61 = vpack.c.bf16 %v1750_v59, %v1746_v57 }
 0x11c   : > { %v1756_v62 = vpop.f32.mrf.mxu0 }
 0x11e   : > { %v378_v63 = vpop.f32.mrf.mxu0 }
 0x120   : > { %v379_v1 = vpop.f32.mrf.mxu0 }
 0x128   : > { %407 = vxpose.xlu1.c.b16.start.end [1/1] (short) %v384_v3, 128 }
 0x16d   : > { %v399_v4 = vpop.trf.xlu1 }
 0x16e   : > { %1164 = vmatmul.mubr.msk.bf16.vlgmr.msra.gmra.mxu1 %vm423_vm2, %v399_v4 }
 0x16f   : > { %521 = vmatprep.mubr.bf16.mxu1 %v1544_v0 }
 0x171   : > { %v400_v5 = vpop.trf.xlu1 }
 0x175   : > { %v401_v6 = vpop.trf.xlu1 }
 0x176   : > { %1165 = vmatmul.mubr.msk.bf16.gmra.mxu1 %vm423_vm2, %v400_v5 }
 0x177   : > { %531 = vmatprep.mubr.bf16.mxu1 %v1544_v0 }
 0x179   : > { %v402_v7 = vpop.trf.xlu1 }
 0x17d   : > { %v403_v8 = vpop.trf.xlu1 }
 0x17e   : > { %1166 = vmatmul.mubr.msk.bf16.gmra.mxu1 %vm423_vm2, %v401_v6 }
 0x17f   : > { %541 = vmatprep.mubr.bf16.mxu1 %v1544_v0 }
 0x181   : > { %v404_v9 = vpop.trf.xlu1 }
 0x185   : > { %v405_v10 = vpop.trf.xlu1 }
 0x186   : > { %1167 = vmatmul.mubr.msk.bf16.gmra.mxu1 %vm423_vm2, %v402_v7 }
 0x187   : > { %551 = vmatprep.mubr.bf16.mxu1 %v1544_v0 }
 0x189   : > { %v406_v11 = vpop.trf.xlu1 }
 0x18d   : > { %v415_v12 = vpop.trf.xlu1 }
 0x18e   : > { %1168 = vmatmul.mubr.msk.bf16.gmra.mxu1 %vm423_vm2, %v403_v8 }
 0x18f   : > { %561 = vmatprep.mubr.bf16.mxu1 %v1544_v0 }
 0x191   : > { %v416_v13 = vpop.trf.xlu1 }
 0x195   : > { %v417_v14 = vpop.trf.xlu1 }
 0x196   : > { %1169 = vmatmul.mubr.msk.bf16.gmra.mxu1 %vm423_vm2, %v404_v9 }
 0x197   : > { %571 = vmatprep.mubr.bf16.mxu1 %v1544_v0 }
 0x199   : > { %v418_v15 = vpop.trf.xlu1 }
 0x19d   : > { %v419_v16 = vpop.trf.xlu1 }
 0x19e   : > { %1170 = vmatmul.mubr.msk.bf16.gmra.mxu1 %vm423_vm2, %v405_v10 }
 0x19f   : > { %581 = vmatprep.mubr.bf16.mxu1 %v1544_v0 }
 0x1a1   : > { %v420_v17 = vpop.trf.xlu1 }
 0x1a5   : > { %v421_v18 = vpop.trf.xlu1 }
 0x1a6   : > { %1171 = vmatmul.mubr.msk.bf16.gmra.mxu1 %vm423_vm2, %v406_v11 }
 0x1a7   : > { %591 = vmatprep.mubr.bf16.mxu1 %v1544_v0 }
 0x1a9   : > { %v422_v19 = vpop.trf.xlu1 }
 0x1ae   : > { %1172 = vmatmul.mubr.msk.bf16.gmra.mxu1 %vm423_vm2, %v415_v12 }
 0x1af   : > { %601 = vmatprep.mubr.bf16.mxu1 %v1544_v0 }
 0x1b6   : > { %1173 = vmatmul.mubr.msk.bf16.gmra.mxu1 %vm423_vm2, %v416_v13 }
 0x1b7   : > { %611 = vmatprep.mubr.bf16.mxu1 %v1544_v0 }
 0x1be   : > { %1174 = vmatmul.mubr.msk.bf16.gmra.mxu1 %vm423_vm2, %v417_v14 }
 0x1bf   : > { %621 = vmatprep.mubr.bf16.mxu1 %v1544_v0 }
 0x1c6   : > { %1175 = vmatmul.mubr.msk.bf16.gmra.mxu1 %vm423_vm2, %v418_v15 }
 0x1c7   : > { %631 = vmatprep.mubr.bf16.mxu1 %v1544_v0 }
 0x1ce   : > { %1176 = vmatmul.mubr.msk.bf16.gmra.mxu1 %vm423_vm2, %v419_v16 }
 0x1cf   : > { %641 = vmatprep.mubr.bf16.mxu1 %v1544_v0 }
 0x1d6   : > { %1177 = vmatmul.mubr.msk.bf16.gmra.mxu1 %vm423_vm2, %v420_v17 }
 0x1d7   : > { %651 = vmatprep.mubr.bf16.mxu1 %v1544_v0 }
 0x1de   : > { %1178 = vmatmul.mubr.msk.bf16.gmra.mxu1 %vm423_vm2, %v421_v18 }
 0x1df   : > { %661 = vmatprep.mubr.bf16.mxu1 %v1544_v0 }
 0x1e6   : > { %1179 = vmatmul.mubr.msk.bf16.gmra.mxu1 %vm423_vm2, %v422_v19 }
 0x22e   : > { %v513_v20 = vpop.f32.mrf.mxu1 }
 0x22f   : > { %v1180_v21 = vclamps-f32 %v513_v20, 50.0 }
 0x230   : > { %v515_v22 = vpop.f32.mrf.mxu1 }
 0x231   : > { %v1181_v23 = vclamps-f32 %v515_v22, 50.0  ;;  %v800_v24 = vmul.f32 1.442695, %v1180_v21 }
 0x232   : > { %v517_v25 = vpop.f32.mrf.mxu1 }
 0x233   : > { %v1182_v26 = vclamps-f32 %v517_v25, 50.0  ;;  %v802_v27 = vmul.f32 1.442695, %v1181_v23  ;;  %1307 = vpow2.f32 %v800_v24 }
 0x234   : > { %v519_v28 = vpop.f32.mrf.mxu1 }
 0x235   : > { %v804_v29 = vmul.f32 1.442695, %v1182_v26  ;;  %v1183_v30 = vclamps-f32 %v519_v28, 50.0 }
 0x236   : > { %v523_v31 = vpop.f32.mrf.mxu1 }
 0x237   : > { %1309 = vpow2.f32 %v804_v29  ;;  %v806_v32 = vmul.f32 1.442695, %v1183_v30  ;;  %v1184_v33 = vclamps-f32 %v523_v31, 50.0 }
 0x238   : > { %1311 = vpow2.f32 %v802_v27  ;;  %v525_v0 = vpop.f32.mrf.mxu1 }
 0x239   : > { %1313 = vpow2.f32 %v806_v32  ;;  %v1185_v34 = vclamps-f32 %v525_v0, 50.0  ;;  %v808_v35 = vmul.f32 1.442695, %v1184_v33 }
 0x23a   : > { %v527_v36 = vpop.f32.mrf.mxu1 }
 0x23b   : > { %v1186_v37 = vclamps-f32 %v527_v36, 50.0  ;;  %v810_v38 = vmul.f32 1.442695, %v1185_v34  ;;  %1315 = vpow2.f32 %v808_v35 }
 0x23c   : > { %v529_v39 = vpop.f32.mrf.mxu1 }
 0x23d   : > { %v812_v40 = vmul.f32 1.442695, %v1186_v37  ;;  %v1187_v41 = vclamps-f32 %v529_v39, 50.0 }
 0x23e   : > { %v1789_v44 = vpop.f32.mrf.mxu1 }
 0x23f   : > { %1317 = vpow2.f32 %v812_v40  ;;  %v814_v45 = vmul.f32 1.442695, %v1187_v41 }
 0x240   : > { %1319 = vpow2.f32 %v810_v38  ;;  %v1791_v46 = vpop.f32.mrf.mxu1  ;;  %v1795_v49 = vpop.eup %1307 }
 0x241   : > { %1321 = vpow2.f32 %v814_v45 }
 0x242   : > { %v1793_v48 = vpop.f32.mrf.mxu1 }
 0x244   : > { %v1797_v50 = vpop.eup %1309  ;;  %v539_v51 = vpop.f32.mrf.mxu1 }
 0x245   : > { %v1799_v52 = vpop.eup %1311  ;;  %v928_v53 = vpack.c.bf16 %v1797_v50, %v1795_v49  ;;  %v1191_v19 = vclamps-f32 %v539_v51, 50.0 }
 0x246   : > { %v1803_v56 = vpop.eup %1313  ;;  %v1805_v63 = vpop.f32.mrf.mxu1 }
 0x247   : > { %v929_v1 = vpack.c.bf16 %v1803_v56, %v1799_v52  ;;  %v822_v25 = vmul.f32 1.442695, %v1191_v19 }
 0x248   : > { %v545_v2 = vpop.f32.mrf.mxu1  ;;  %v1809_v4 = vpop.eup %1315 }
 0x249   : > { %v1193_v21 = vclamps-f32 %v545_v2, 50.0  ;;  %1323 = vpow2.f32 %v822_v25 }
 0x24a   : > { %v547_v3 = vpop.f32.mrf.mxu1 }
 0x24b   : > { %v1194_v22 = vclamps-f32 %v547_v3, 50.0  ;;  %v826_v28 = vmul.f32 1.442695, %v1193_v21 }
 0x24c   : > { %v1811_v5 = vpop.eup %1317  ;;  %v549_v6 = vpop.f32.mrf.mxu1 }
 0x24d   : > { %v1813_v7 = vpop.eup %1319  ;;  %v930_v8 = vpack.c.bf16 %v1811_v5, %v1809_v4  ;;  %v1195_v24 = vclamps-f32 %v549_v6, 50.0  ;;  %v828_v30 = vmul.f32 1.442695, %v1194_v22  ;;  %1325 = vpow2.f32 %v826_v28 }
 0x24e   : > { %v1817_v9 = vpop.eup %1321  ;;  %v1819_v10 = vpop.f32.mrf.mxu1 }
 0x24f   : > { %v931_v11 = vpack.c.bf16 %v1817_v9, %v1813_v7  ;;  %v830_v33 = vmul.f32 1.442695, %v1195_v24  ;;  %1327 = vpow2.f32 %v828_v30 }
 0x250   : > { %v1823_v12 = vpop.f32.mrf.mxu1 }
 0x251   : > { %1329 = vpow2.f32 %v830_v33 }
 0x252   : > { %v1825_v13 = vpop.f32.mrf.mxu1 }
 0x254   : > { %v559_v14 = vpop.f32.mrf.mxu1 }
 0x255   : > { %v1199_v26 = vclamps-f32 %v559_v14, 50.0 }
 0x256   : > { %v1827_v15 = vpop.f32.mrf.mxu1  ;;  %v1830_v33 = vpop.eup %1323 }
 0x257   : > { %v838_v34 = vmul.f32 1.442695, %v1199_v26 }
 0x258   : > { %v565_v16 = vpop.f32.mrf.mxu1 }
 0x259   : > { %v1201_v29 = vclamps-f32 %v565_v16, 50.0  ;;  %1331 = vpow2.f32 %v838_v34 }
 0x25a   : > { %v567_v17 = vpop.f32.mrf.mxu1 }
 0x25b   : > { %v1202_v31 = vclamps-f32 %v567_v17, 50.0  ;;  %v842_v37 = vmul.f32 1.442695, %v1201_v29 }
 0x25c   : > { %v569_v18 = vpop.f32.mrf.mxu1 }
 0x25d   : > { %v1203_v0 = vclamps-f32 %v569_v18, 50.0  ;;  %v844_v38 = vmul.f32 1.442695, %v1202_v31  ;;  %1333 = vpow2.f32 %v842_v37 }
 0x25e   : > { %v573_v20 = vpop.f32.mrf.mxu1 }
 0x25f   : > { %v846_v40 = vmul.f32 1.442695, %v1203_v0  ;;  %1335 = vpow2.f32 %v844_v38  ;;  %v1204_v18 = vclamps-f32 %v573_v20, 50.0  ;;  %v1197_v0 = vclamps-f32 %v1823_v12, 50.0 }
 0x260   : > { %v575_v23 = vpop.f32.mrf.mxu1 }
 0x261   : > { %v1205_v3 = vclamps-f32 %v575_v23, 50.0  ;;  %1337 = vpow2.f32 %v846_v40  ;;  %v848_v23 = vmul.f32 1.442695, %v1204_v18 }
 0x262   : > { %v577_v27 = vpop.f32.mrf.mxu1 }
 0x263   : > { %v1206_v16 = vclamps-f32 %v577_v27, 50.0  ;;  %v850_v25 = vmul.f32 1.442695, %v1205_v3  ;;  %v1200_v27 = vclamps-f32 %v1827_v15, 50.0  ;;  %v1196_v15 = vclamps-f32 %v1819_v10, 50.0 }
 0x264   : > { %v579_v32 = vpop.f32.mrf.mxu1  ;;  %v834_v3 = vmul.f32 1.442695, %v1197_v0 }
 0x265   : > { %v1207_v35 = vclamps-f32 %v579_v32, 50.0  ;;  %v852_v29 = vmul.f32 1.442695, %v1206_v16  ;;  %v832_v18 = vmul.f32 1.442695, %v1196_v15 }
 0x266   : > { %v583_v36 = vpop.f32.mrf.mxu1 }
 0x267   : > { %v854_v45 = vmul.f32 1.442695, %v1207_v35  ;;  %v1208_v51 = vclamps-f32 %v583_v36, 50.0  ;;  %v1833_v35 = vpop.eup %1325  ;;  %v1198_v36 = vclamps-f32 %v1825_v13, 50.0 }
 0x268   : > { %v585_v39 = vpop.f32.mrf.mxu1 }
 0x269   : > { %v1209_v41 = vclamps-f32 %v585_v39, 50.0  ;;  %1339 = vpow2.f32 %v854_v45  ;;  %v856_v22 = vmul.f32 1.442695, %v1208_v51  ;;  %v1836_v39 = vpop.eup %1327  ;;  %v840_v51 = vmul.f32 1.442695, %v1200_v27 }
 0x26a   : > { %v587_v2 = vpop.f32.mrf.mxu1  ;;  %v1839_v45 = vpop.eup %1329  ;;  %v836_v16 = vmul.f32 1.442695, %v1198_v36 }
 0x26b   : > { %v858_v6 = vmul.f32 1.442695, %v1209_v41  ;;  %v1210_v14 = vclamps-f32 %v587_v2, 50.0  ;;  %v1841_v2 = vpop.eup %1331 }
 0x26c   : > { %v589_v17 = vpop.f32.mrf.mxu1 }
 0x26d   : > { %v860_v19 = vmul.f32 1.442695, %v1210_v14  ;;  %v1211_v21 = vclamps-f32 %v589_v17, 50.0  ;;  %1341 = vpow2.f32 %v858_v6  ;;  %v1843_v14 = vpop.eup %1333 }
 0x26e   : > { %v593_v24 = vpop.f32.mrf.mxu1  ;;  %v1845_v10 = vpop.eup %1335 }
 0x26f   : > { %v862_v26 = vmul.f32 1.442695, %v1211_v21  ;;  %v1212_v28 = vclamps-f32 %v593_v24, 50.0  ;;  %1343 = vpow2.f32 %v860_v19  ;;  %v1338_v21 = vpop.eup %1337 }
 0x270   : > { %v595_v30 = vpop.f32.mrf.mxu1 }
 0x271   : > { %1345 = vpow2.f32 %v862_v26  ;;  %v1213_v31 = vclamps-f32 %v595_v30, 50.0  ;;  %v864_v32 = vmul.f32 1.442695, %v1212_v28  ;;  %v1189_v28 = vclamps-f32 %v1791_v46, 50.0 }
 0x272   : > { %1347 = vpow2.f32 %v856_v22  ;;  %v597_v20 = vpop.f32.mrf.mxu1  ;;  %v1192_v22 = vclamps-f32 %v1805_v63, 50.0  ;;  %v1188_v63 = vclamps-f32 %v1789_v44, 50.0 }
 0x273   : > { %1349 = vpow2.f32 %v850_v25  ;;  %v1214_v34 = vclamps-f32 %v597_v20, 50.0  ;;  %v866_v37 = vmul.f32 1.442695, %v1213_v31 }
 0x274   : > { %1351 = vpow2.f32 %v852_v29  ;;  %v599_v38 = vpop.f32.mrf.mxu1  ;;  %v824_v36 = vmul.f32 1.442695, %v1192_v22 }
 0x275   : > { %1353 = vpow2.f32 %v848_v23  ;;  %v868_v40 = vmul.f32 1.442695, %v1214_v34  ;;  %v1215_v41 = vclamps-f32 %v599_v38, 50.0  ;;  %v1190_v23 = vclamps-f32 %v1793_v48, 50.0 }
 0x276   : > { %1355 = vpow2.f32 %v864_v32  ;;  %v603_v12 = vpop.f32.mrf.mxu1  ;;  %v1340_v26 = vpop.eup %1339  ;;  %v818_v38 = vmul.f32 1.442695, %v1189_v28 }
 0x277   : > { %1357 = vpow2.f32 %v868_v40  ;;  %v870_v13 = vmul.f32 1.442695, %v1215_v41  ;;  %v1216_v6 = vclamps-f32 %v603_v12, 50.0  ;;  %v820_v41 = vmul.f32 1.442695, %v1190_v23 }
 0x278   : > { %1359 = vpow2.f32 %v866_v37  ;;  %v605_v17 = vpop.f32.mrf.mxu1 }
 0x279   : > { %1361 = vpow2.f32 %v870_v13  ;;  %v1217_v19 = vclamps-f32 %v605_v17, 50.0  ;;  %v872_v24 = vmul.f32 1.442695, %v1216_v6  ;;  %v816_v6 = vmul.f32 1.442695, %v1188_v63 }
 0x27a   : > { %1363 = vpow2.f32 %v840_v51  ;;  %v607_v25 = vpop.f32.mrf.mxu1  ;;  %v1342_v30 = vpop.eup %1341 }
 0x27b   : > { %1365 = vpow2.f32 %v834_v3  ;;  %v1218_v29 = vclamps-f32 %v607_v25, 50.0  ;;  %v874_v31 = vmul.f32 1.442695, %v1217_v19  ;;  %v939_v25 = vpack.c.bf16 %v1338_v21, %v1843_v14 }
 0x27c   : > { %1367 = vpow2.f32 %v836_v16  ;;  %v609_v27 = vpop.f32.mrf.mxu1  ;;  %v1344_v32 = vpop.eup %1343 }
 0x27d   : > { %1369 = vpow2.f32 %v832_v18  ;;  %v876_v20 = vmul.f32 1.442695, %v1218_v29  ;;  %v1219_v0 = vclamps-f32 %v609_v27, 50.0 }
 0x27e   : > { %v1346_v34 = vpop.eup %1345  ;;  %1371 = vpow2.f32 %v872_v24  ;;  %v1851_v37 = vpop.f32.mrf.mxu1 }
 0x27f   : > { %v1348_v46 = vpop.eup %1347  ;;  %1373 = vpow2.f32 %v876_v20  ;;  %v878_v15 = vmul.f32 1.442695, %v1219_v0  ;;  %v943_v40 = vpack.c.bf16 %v1346_v34, %v1342_v30 }
 0x280   : > { %v1350_v48 = vpop.eup %1349  ;;  %1375 = vpow2.f32 %v874_v31  ;;  %v1853_v51 = vpop.f32.mrf.mxu1  ;;  %v942_v12 = vpack.c.bf16 %v1344_v32, %v1348_v46 }
 0x281   : > { %v1352_v3 = vpop.eup %1351  ;;  %1377 = vpow2.f32 %v878_v15  ;;  %960 = vmatprep.subr.bf16.mxu0 %v943_v40  ;;  %v941_v13 = vpack.c.bf16 %v1340_v26, %v1350_v48 }
 0x282   : > { %v1354_v44 = vpop.eup %1353  ;;  %1379 = vpow2.f32 %v824_v36  ;;  %v1855_v16 = vpop.f32.mrf.mxu1  ;;  %961 = vmatpush1.bf16.msra.mxu0 %v942_v12 }
 0x283   : > { %v1857_v17 = vpop.eup %1355  ;;  %1381 = vpow2.f32 %v818_v38  ;;  %962 = vmatprep.subr.bf16.mxu0 %v941_v13  ;;  %v940_v22 = vpack.c.bf16 %v1352_v3, %v1354_v44 }
 0x284   : > { %v1859_v18 = vpop.eup %1357  ;;  %1383 = vpow2.f32 %v820_v41  ;;  %v1861_v19 = vpop.f32.mrf.mxu1 }
 0x285   : > { %v1863_v24 = vpop.eup %1359  ;;  %v944_v26 = vpack.c.bf16 %v1859_v18, %v1857_v17  ;;  %1385 = vpow2.f32 %v816_v6 }
 0x286   : > { %v1868_v28 = vpop.eup %1361  ;;  %v1870_v29 = vpop.f32.mrf.mxu1  ;;  %963 = vmatpush1.bf16.msra.mxu0 %v940_v22 }
 0x287   : > { %v1364_v30 = vpop.eup %1363  ;;  %964 = vmatprep.subr.bf16.mxu0 %v939_v25  ;;  %v945_v23 = vpack.c.bf16 %v1868_v28, %v1863_v24 }
 0x288   : > { %v1366_v31 = vpop.eup %1365  ;;  %v1874_v27 = vpop.f32.mrf.mxu1  ;;  %v938_v32 = vpack.c.bf16 %v1845_v10, %v1364_v30  ;;  %v935_v10 = vpack.c.bf16 %v1839_v45, %v1833_v35 }
 0x289   : > { %v1368_v14 = vpop.eup %1367  ;;  %v937_v21 = vpack.c.bf16 %v1841_v2, %v1366_v31 }
 0x28a   : > { %v1370_v20 = vpop.eup %1369  ;;  %v1878_v0 = vpop.f32.mrf.mxu1  ;;  %965 = vmatpush1.bf16.msra.mxu0 %v938_v32 }
 0x28b   : > { %v1880_v34 = vpop.eup %1371  ;;  %966 = vmatprep.subr.bf16.mxu0 %v937_v21  ;;  %v936_v46 = vpack.c.bf16 %v1368_v14, %v1370_v20 }
 0x28c   : > { %v1882_v63 = vpop.eup %1373  ;;  %v1884_v36 = vpop.f32.mrf.mxu1 }
 0x28d   : > { %v1886_v38 = vpop.eup %1375  ;;  %v946_v2 = vpack.c.bf16 %v1882_v63, %v1880_v34 }
 0x28e   : > { %v1892_v15 = vpop.eup %1377  ;;  %v1894_v40 = vpop.f32.mrf.mxu1  ;;  %967 = vmatpush1.bf16.msra.mxu0 %v936_v46 }
 0x28f   : > { %v1380_v48 = vpop.eup %1379  ;;  %968 = vmatprep.subr.bf16.mxu0 %v935_v10  ;;  %v947_v41 = vpack.c.bf16 %v1892_v15, %v1886_v38  ;;  %v277_v38 = vpop.permute.xlu0 %276 }
 0x290   : > { %v1382_v12 = vpop.eup %1381  ;;  %v1898_v3 = vpop.f32.mrf.mxu1  ;;  %v934_v13 = vpack.c.bf16 %v1836_v39, %v1380_v48  ;;  %v377_v34 = vadd.f32 %v1756_v62, %v277_v38  ;;  %v375_v17 = vadd.f32 %v1752_v60, %v277_v38  ;;  %v1028_v60 = vshrl.u32 %v1027_v55, 7 }
 0x291   : > { %v1384_v44 = vpop.eup %1383  ;;  %v933_v35 = vpack.c.bf16 %v1830_v33, %v1382_v12 }
 0x292   : > { %v1902_v45 = vpop.f32.mrf.mxu1  ;;  %969 = vmatpush1.bf16.msra.mxu0 %v934_v13  ;;  %v1386_v6 = vpop.eup %1385  ;;  %v390_v63 = vpack.c.bf16 %v377_v34, %v377_v34  ;;  %v389_v18 = vpack.c.bf16 %v375_v17, %v375_v17 }
 0x293   : > { %970 = vmatprep.subr.bf16.mxu0 %v933_v35  ;;  %v932_v25 = vpack.c.bf16 %v1384_v44, %v1386_v6 }
 0x294   : > { %v639_v22 = vpop.f32.mrf.mxu1 }
 0x296   : > { %v643_v30 = vpop.f32.mrf.mxu1  ;;  %971 = vmatpush1.bf16.msra.mxu0 %v932_v25 }
 0x297   : > { %972 = vmatprep.subr.bf16.mxu0 %v931_v11 }
 0x298   : > { %v645_v31 = vpop.f32.mrf.mxu1 }
 0x29a   : > { %v647_v32 = vpop.f32.mrf.mxu1  ;;  %973 = vmatpush1.bf16.msra.mxu0 %v930_v8 }
 0x29b   : > { %974 = vmatprep.subr.bf16.mxu0 %v929_v1  ;;  %v1234_v25 = vclamps-f32 %v647_v32, 50.0  ;;  %v1228_v32 = vclamps-f32 %v1894_v40, 50.0  ;;  %v1221_v40 = vclamps-f32 %v1853_v51, 50.0 }
 0x29c   : > { %v649_v33 = vpop.f32.mrf.mxu1 }
 0x29d   : > { %v1235_v12 = vclamps-f32 %v649_v33, 50.0  ;;  %v1229_v33 = vclamps-f32 %v1898_v3, 50.0  ;;  %v1226_v3 = vclamps-f32 %v1878_v0, 50.0 }
 0x29e   : > { %v653_v39 = vpop.f32.mrf.mxu1  ;;  %975 = vmatpush1.bf16.msra.mxu0 %v928_v53  ;;  %v1233_v53 = vclamps-f32 %v645_v31, 50.0  ;;  %v1227_v31 = vclamps-f32 %v1884_v36, 50.0  ;;  %v1224_v36 = vclamps-f32 %v1870_v29, 50.0 }
 0x29f   : > { %v1236_v49 = vclamps-f32 %v653_v39, 50.0  ;;  %v1230_v39 = vclamps-f32 %v1902_v45, 50.0  ;;  %v1223_v45 = vclamps-f32 %v1861_v19, 50.0 }
 0x2a0   : > { %v655_v14 = vpop.f32.mrf.mxu1 }
 0x2a1   : > { %v1237_v8 = vclamps-f32 %v655_v14, 50.0  ;;  %v1232_v14 = vclamps-f32 %v643_v30, 50.0  ;;  %v1225_v30 = vclamps-f32 %v1874_v27, 50.0 }
 0x2a2   : > { %v657_v21 = vpop.f32.mrf.mxu1 }
 0x2a3   : > { %v1238_v56 = vclamps-f32 %v657_v21, 50.0  ;;  %v914_v35 = vmul.f32 1.442695, %v1237_v8  ;;  %v906_v21 = vmul.f32 1.442695, %v1233_v53 }
 0x2a4   : > { %v659_v7 = vpop.f32.mrf.mxu1  ;;  %v894_v8 = vmul.f32 1.442695, %v1227_v31 }
 0x2a5   : > { %v1239_v9 = vclamps-f32 %v659_v7, 50.0  ;;  %v916_v7 = vmul.f32 1.442695, %v1238_v56  ;;  %v890_v56 = vmul.f32 1.442695, %v1225_v30 }
 0x2a6   : > { %v663_v11 = vpop.f32.mrf.mxu1 }
 0x2a7   : > { %v918_v10 = vmul.f32 1.442695, %v1239_v9  ;;  %v1240_v4 = vclamps-f32 %v663_v11, 50.0  ;;  %v1231_v9 = vclamps-f32 %v639_v22, 50.0  ;;  %v910_v11 = vmul.f32 1.442695, %v1235_v12 }
 0x2a8   : > { %v665_v20 = vpop.f32.mrf.mxu1  ;;  %v904_v22 = vmul.f32 1.442695, %v1232_v14  ;;  %v892_v12 = vmul.f32 1.442695, %v1226_v3 }
 0x2a9   : > { %v1241_v46 = vclamps-f32 %v665_v20, 50.0  ;;  %1387 = vpow2.f32 %v918_v10  ;;  %v920_v50 = vmul.f32 1.442695, %v1240_v4  ;;  %v912_v20 = vmul.f32 1.442695, %v1236_v49 }
 0x2aa   : > { %v667_v5 = vpop.f32.mrf.mxu1  ;;  %v902_v10 = vmul.f32 1.442695, %v1231_v9  ;;  %v898_v4 = vmul.f32 1.442695, %v1229_v33  ;;  %v888_v49 = vmul.f32 1.442695, %v1224_v36 }
 0x2ab   : > { %v922_v48 = vmul.f32 1.442695, %v1241_v46  ;;  %v1242_v52 = vclamps-f32 %v667_v5, 50.0  ;;  %v908_v46 = vmul.f32 1.442695, %v1234_v25 }
 0x2ac   : > { %v669_v1 = vpop.f32.mrf.mxu1  ;;  %v900_v5 = vmul.f32 1.442695, %v1230_v39 }
 0x2ad   : > { %v924_v13 = vmul.f32 1.442695, %v1242_v52  ;;  %v1243_v44 = vclamps-f32 %v669_v1, 50.0  ;;  %1389 = vpow2.f32 %v922_v48  ;;  %v896_v48 = vmul.f32 1.442695, %v1228_v32 }
 0x2ae   : > { %v1222_v1 = vclamps-f32 %v1855_v16, 50.0 }
 0x2af   : > { %v926_v6 = vmul.f32 1.442695, %v1243_v44  ;;  %1391 = vpow2.f32 %v924_v13  ;;  %v886_v13 = vmul.f32 1.442695, %v1223_v45  ;;  %v1220_v44 = vclamps-f32 %v1851_v37, 50.0 }
 0x2b1   : > { %1393 = vpow2.f32 %v926_v6  ;;  %v880_v9 = vmul.f32 1.442695, %v1220_v44 }
 0x2b2   : > { %1395 = vpow2.f32 %v920_v50  ;;  %v882_v50 = vmul.f32 1.442695, %v1221_v40 }
 0x2b3   : > { %1397 = vpow2.f32 %v914_v35  ;;  %v884_v35 = vmul.f32 1.442695, %v1222_v1 }
 0x2b4   : > { %1399 = vpow2.f32 %v916_v7 }
 0x2b5   : > { %1401 = vpow2.f32 %v910_v11 }
 0x2b6   : > { %1403 = vpow2.f32 %v912_v20  ;;  %v1388_v52 = vpop.eup %1387 }
 0x2b7   : > { %1405 = vpow2.f32 %v906_v21 }
 0x2b8   : > { %1407 = vpow2.f32 %v908_v46 }
 0x2b9   : > { %1409 = vpow2.f32 %v902_v10 }
 0x2ba   : > { %1411 = vpow2.f32 %v904_v22  ;;  %v1390_v27 = vpop.eup %1389 }
 0x2bb   : > { %1413 = vpow2.f32 %v898_v4 }
 0x2bc   : > { %1415 = vpow2.f32 %v900_v5  ;;  %v1392_v0 = vpop.eup %1391 }
 0x2bd   : > { %1417 = vpow2.f32 %v894_v8 }
 0x2be   : > { %v1394_v19 = vpop.eup %1393  ;;  %1419 = vpow2.f32 %v896_v48 }
 0x2bf   : > { %v1396_v29 = vpop.eup %1395  ;;  %1421 = vpow2.f32 %v890_v56  ;;  %v959_v53 = vpack.c.bf16 %v1394_v19, %v1390_v27 }
 0x2c0   : > { %v1398_v51 = vpop.eup %1397  ;;  %1423 = vpow2.f32 %v892_v12  ;;  %v958_v6 = vpack.c.bf16 %v1392_v0, %v1396_v29 }
 0x2c1   : > { %v1400_v25 = vpop.eup %1399  ;;  %1425 = vpow2.f32 %v886_v13  ;;  %976 = vmatprep.subr.bf16.mxu0 %v959_v53  ;;  %v957_v16 = vpack.c.bf16 %v1388_v52, %v1398_v51  ;;  %v1439_v53 = vld [vmem:[%s1679_s16] sm:$0xff] }
 0x2c2   : > { %v1402_v7 = vpop.eup %1401  ;;  %1427 = vpow2.f32 %v888_v49  ;;  %977 = vmatpush2.bf16.msra.mxu0 %v958_v6 }
 0x2c3   : > { %v1404_v11 = vpop.eup %1403  ;;  %1429 = vpow2.f32 %v882_v50  ;;  %978 = vmatprep.subr.bf16.mxu0 %v957_v16 }
 0x2c4   : > { %v1406_v37 = vpop.eup %1405  ;;  %1431 = vpow2.f32 %v884_v35  ;;  %v956_v14 = vpack.c.bf16 %v1400_v25, %v1404_v11  ;;  %v1440_v35 = vld [vmem:[%s1679_s16 + $0x10] sm:$0xff]  ;;  %v1441_v25 = vld [vmem:[%s1679_s16 + $0x20] sm:$0xff] }
 0x2c5   : > { %v1408_v20 = vpop.eup %1407  ;;  %v955_v33 = vpack.c.bf16 %v1402_v7, %v1406_v37  ;;  %1433 = vpow2.f32 %v880_v9  ;;  %v1442_v7 = vld [vmem:[%s1679_s16 + $0x30] sm:$0xff] }
 0x2c6   : > { %v1410_v21 = vpop.eup %1409  ;;  %979 = vmatpush2.bf16.msra.mxu0 %v956_v14 }
 0x2c7   : > { %v1412_v39 = vpop.eup %1411  ;;  %980 = vmatprep.subr.bf16.mxu0 %v955_v33  ;;  %v1443_v33 = vld [vmem:[%s1679_s16 + $0x8] sm:$0xff] }
 0x2c8   : > { %v1414_v46 = vpop.eup %1413  ;;  %v954_v31 = vpack.c.bf16 %v1408_v20, %v1412_v39  ;;  %v1444_v39 = vld [vmem:[%s1679_s16 + $0x18] sm:$0xff] }
 0x2c9   : > { %v1416_v10 = vpop.eup %1415  ;;  %v953_v32 = vpack.c.bf16 %v1410_v21, %v1414_v46 }
 0x2ca   : > { %v1418_v22 = vpop.eup %1417  ;;  %981 = vmatpush2.bf16.msra.mxu0 %v954_v31  ;;  %v1445_v31 = vld [vmem:[%s1679_s16 + $0x28] sm:$0xff] }
 0x2cb   : > { %v1420_v30 = vpop.eup %1419  ;;  %982 = vmatprep.subr.bf16.mxu0 %v953_v32  ;;  %v1446_v32 = vld [vmem:[%s1679_s16 + $0x38] sm:$0xff] }
 0x2cc   : > { %v1422_v4 = vpop.eup %1421  ;;  %v952_v3 = vpack.c.bf16 %v1416_v10, %v1420_v30 }
 0x2cd   : > { %v1424_v5 = vpop.eup %1423  ;;  %v951_v45 = vpack.c.bf16 %v1418_v22, %v1422_v4 }
 0x2ce   : > { %v1426_v8 = vpop.eup %1425  ;;  %983 = vmatpush2.bf16.msra.mxu0 %v952_v3 }
 0x2cf   : > { %v1428_v36 = vpop.eup %1427  ;;  %984 = vmatprep.subr.bf16.mxu0 %v951_v45 }
 0x2d0   : > { %v1430_v48 = vpop.eup %1429  ;;  %v950_v52 = vpack.c.bf16 %v1424_v5, %v1428_v36 }
 0x2d1   : > { %v1432_v40 = vpop.eup %1431  ;;  %v949_v56 = vpack.c.bf16 %v1426_v8, %v1430_v48 }
 0x2d2   : > { %985 = vmatpush2.bf16.msra.mxu0 %v950_v52  ;;  %v1434_v27 = vpop.eup %1433 }
 0x2d3   : > { %986 = vmatprep.subr.bf16.mxu0 %v949_v56  ;;  %v948_v1 = vpack.c.bf16 %v1432_v40, %v1434_v27 }
 0x2d6   : > { %987 = vmatpush2.bf16.msra.mxu0 %v948_v1 }
 0x2d7   : > { %988 = vmatprep.subr.bf16.mxu0 %v947_v41 }
 0x2da   : > { %989 = vmatpush2.bf16.msra.mxu0 %v946_v2  ;;  %v1029_v2 = vsub.s32 0, %v1028_v60 }
 0x2db   : > { %990 = vmatprep.subr.bf16.mxu0 %v945_v23  ;;  %v1024_v23 = vstv %s1023_s24 }
 0x2de   : > { %991 = vmatpush2.bf16.msra.mxu0 %v944_v26 }
 0x2e1   : > { %993 = vmatmul.mubr.bf16.vlgmr.msra.gmra.mxu0 %v385_v47 }
 0x2e2   : > { %1002 = vmatprep.mubr.bf16.mxu0 %v388_v61 }
 0x2e9   : > { %1003 = vmatmul.mubr.bf16.gmra.mxu0 %v387_v58 }
 0x2ea   : > { %1012 = vmatprep.mubr.bf16.mxu0 %v390_v63 }
 0x2f1   : > { %1013 = vmatmul.mubr.bf16.gmra.mxu0 %v389_v18 }
 0x3a1   : > { %v994_v24 = vpop.f32.mrf.mxu0 }
 0x3a3   : > { %v996_v42 = vpop.f32.mrf.mxu0 }
 0x3a5   : > { %v998_v43 = vpop.f32.mrf.mxu0 }
 0x3a7   : > { %v1000_v47 = vpop.f32.mrf.mxu0 }
 0x3a9   : > { %v1004_v26 = vpop.f32.mrf.mxu0 }
 0x3ab   : > { %v1006_v57 = vpop.f32.mrf.mxu0 }
 0x3ad   : > { %v1008_v59 = vpop.f32.mrf.mxu0 }
 0x3af   : > { %v1010_v61 = vpop.f32.mrf.mxu0 }
 0x3b1   : > { %v1014_v28 = vpop.f32.mrf.mxu0 }
 0x3b2   : > { %1435 = vrcp.f32 %v1014_v28 }
 0x3b3   : > { %v1016_v62 = vpop.f32.mrf.mxu0 }
 0x3b4   : > { %1437 = vrcp.f32 %v1016_v62 }
 0x3b5   : > { %v1018_v54 = vpop.f32.mrf.mxu0 }
 0x3b7   : > { %v1019_v58 = vpop.f32.mrf.mxu0 }
 0x3bf   : > { %v1436_v15 = vpop.eup %1435 }
 0x3c0   : > { %v1025_v41 = vmul.f32 %v1436_v15, %v1024_v23 }
 0x3c1   : > { %v1438_v12 = vpop.eup %1437 }
 0x3c2   : > { %v1030_v0 = vrot.slane %v1025_v41, %v1029_v2  ;;  %v1026_v13 = vmul.f32 %v1438_v12, %v1024_v23 }
 0x3c4   : > { %v1035_v19 = vmul.f32 %v1030_v0, %v994_v24  ;;  %v1037_v44 = vmul.f32 %v1030_v0, %v998_v43  ;;  %v1039_v49 = vmul.f32 %v1030_v0, %v1004_v26  ;;  %v1041_v29 = vmul.f32 %v1030_v0, %v1008_v59 }
 0x3c5   : > { %v1034_v50 = vrot.slane %v1026_v13, %v1029_v2 }
 0x3c6   : > { %v1043_v51 = vadd.f32 %v1439_v53, %v1035_v19  ;;  %v1045_v6 = vadd.f32 %v1440_v35, %v1037_v44  ;;  %v1047_v16 = vadd.f32 %v1441_v25, %v1039_v49  ;;  %v1049_v9 = vadd.f32 %v1442_v7, %v1041_v29 }
 0x3c7   : > { %v1036_v11 = vmul.f32 %v1034_v50, %v996_v42  ;;  %v1038_v37 = vmul.f32 %v1034_v50, %v1000_v47  ;;  %v1040_v14 = vmul.f32 %v1034_v50, %v1006_v57  ;;  %v1042_v20 = vmul.f32 %v1034_v50, %v1010_v61 }
 0x3c8   : > { %1051 = vst [vmem:[%s1953_s30] sm:$0xff] %v1043_v51  ;;  %1053 = vst [vmem:[%s1953_s30 + $0x10] sm:$0xff] %v1045_v6 }
 0x3c9   : > { %1055 = vst [vmem:[%s1953_s30 + $0x20] sm:$0xff] %v1047_v16  ;;  %1057 = vst [vmem:[%s1953_s30 + $0x30] sm:$0xff] %v1049_v9  ;;  %v1044_v21 = vadd.f32 %v1443_v33, %v1036_v11  ;;  %v1046_v46 = vadd.f32 %v1444_v39, %v1038_v37  ;;  %v1048_v10 = vadd.f32 %v1445_v31, %v1040_v14 }
 0x3ca   : > { %v1050_v22 = vadd.f32 %v1446_v32, %v1042_v20 }
 0x3cb   : > { %1052 = vst [vmem:[%s1953_s30 + $0x8] sm:$0xff] %v1044_v21  ;;  %1054 = vst [vmem:[%s1953_s30 + $0x18] sm:$0xff] %v1046_v46 }
 0x3cc   : > { %1056 = vst [vmem:[%s1953_s30 + $0x28] sm:$0xff] %v1048_v10  ;;  %1058 = vst [vmem:[%s1953_s30 + $0x38] sm:$0xff] %v1050_v22 }
 0x3cd   : > { %1488 = shalt.err (!%p1485_p10)
}
 0x3ce   : > { %s1489_s16 = scalar_lea.hbm %s1967_s6, 1024  ;;  %s1493_s13 = scalar_lea.hbm %s2024_s4, 2048 }
 0x3cf   : > { %p1490_p0 = scmp.ne.s32.totalorder %s1967_s6, %s1489_s16  ;;  %p1494_p1 = scmp.lt.s32.totalorder %s1967_s6, %s2024_s4 }
 0x3d0   : > { %p1495_p3 = scmp.lt.s32.totalorder %s1493_s13, %s1489_s16 }
 0x3d1   : > { %p1491_p2 = pnand %p1490_p0, %p2033_p12 }
 0x3d2   : > { %p1496_p6 = por %p1495_p3, %p1494_p1 }
 0x3d3   : > { %p1492_p9 = pneg %p1491_p2 }
 0x3d5   : > { %p1497_p11 = pnand %p1496_p6, %p1492_p9 }
 0x3d7   : > { %1500 = shalt.err (!%p1497_p11)
}
 0x3d8   : > { %s1546_s24 = smov 256   ;;  %s1547_s26 = smov 16  }
 0x3d9   : > { %1253 = dma.vmem_to_hbm [thread:$0]  (%p2033_p12), %s1969_s5, 1024, %s1967_s6, %s1060_s7, %s1546_s24, %s1546_s24, %s1547_s26  }
 0x3da PF: > { %s1088_s30 = sand.u32 1, %s1527_s17   ;;  %p2034_p13 = scmp.ne.s32.totalorder %s2030_s29, 0 }
 0x3db   : > { %p2035_p4 = scmp.ge.s32.totalorder %s1539_s20, 2  ;;  %s1089_s3 = scalar_lea.sflag [#allocation5], %s1088_s30 }
 0x3dd   : > { %p1260_p5 = pnand %p2035_p4, %p2034_p13 }
 0x3df   : > { %p1261_p7 = pneg %p1260_p5 }
 0x3e1   : > { %1522 = dma.done.wait (%p1261_p7), %s1089_s3, 1024  }
 0x3e2   : > { %1524 = vsyncadd (%p1261_p7), %s1089_s3, 4294966272  ;;  %p18_p8 = scmp.ge.s32.totalorder %s1601_s22, 4   ;;  %s2036_s17 = smov %s1531_s18 }
 0x3e3   : > { %s2037_s18 = smov %s1535_s19  ;;  %s2038_s19 = smov %s1613_s25 }
 0x3e4   : > { %s2039_s20 = smov %s1601_s22  ;;  %20 = sbr.rel (!%p18_p8) target bundleno = 7 (0x7), region = 81 }
 0x3e9   :  { %1094 = vsyncpa [#allocation4], 1 }
 0x3ea   :  { %1096 = vsyncpa [#allocation4 + $0x1], 1 }
 0x3eb   :  { %1097 = vsyncpa [#allocation5], 1 }
 0x3ec   :  { %1099 = vsyncpa [#allocation5 + $0x1], 1 }

</bundles_post_ra>
